<compile_context>
chip_gen: v7x
topology: tpu7x:2x2x1
jax: 0.10.0
libtpu: 0.0.40
codegen_flags: <defaults>
</compile_context>

<pallas_src>
import functools

import jax
import jax.numpy as jnp
from jax import lax
from jax.experimental import pallas as pl
from jax.experimental.pallas import tpu as pltpu


def _round_up(x, m):
    return ((x + m - 1) // m) * m


def _gelu_exact_f32(x):
    # Matches torch.nn.GELU() default (erf-based, not tanh approximation).
    return 0.5 * x * (1.0 + lax.erf(x * 0.7071067811865476))


def mlp_kernel(x_ref, w1_ref, b1_ref, w2_ref, b2_ref, o_ref, acc_ref):
    # Grid: (M//tm, H//th). Axis 0 ("parallel") tiles tokens; axis 1
    # ("arbitrary") streams hidden-dim tiles and accumulates into acc_ref.
    #
    # x_ref : (tm, D)   w1_ref: (D, th)   b1_ref: (1, th) f32
    # w2_ref: (th, D)   b2_ref: (1, D) f32
    # o_ref : (tm, D)   acc_ref: (tm, D) f32 scratch
    h_idx = pl.program_id(1)

    @pl.when(h_idx == 0)
    def _():
        # Fold the fc2 bias into the accumulator init (no epilogue add).
        acc_ref[...] = jnp.broadcast_to(b2_ref[...], acc_ref.shape)

    # fc1 for this hidden tile; f32 MXU accumulation, f32 GELU epilogue.
    h = jnp.dot(x_ref[...], w1_ref[...], preferred_element_type=jnp.float32)
    h = _gelu_exact_f32(h + b1_ref[...])

    # fc2 partial product for this hidden tile, accumulated in f32.
    acc_ref[...] += jnp.dot(h.astype(w2_ref.dtype), w2_ref[...],
                            preferred_element_type=jnp.float32)

    @pl.when(h_idx == pl.num_programs(1) - 1)
    def _():
        o_ref[...] = acc_ref[...].astype(o_ref.dtype)


@functools.partial(jax.jit, static_argnames=("tm", "th", "compute_dtype"))
def mlp_forward(x, w1, b1, w2, b2, *, tm=256, th=512,
                compute_dtype=jnp.bfloat16):
    """Fused MLP: GELU(x @ w1 + b1) @ w2 + b2.

    x: (M, D) float32.  w1: (D, H)  b1: (H,)  w2: (H, D)  b2: (D,).
    Returns (M, D) in x.dtype.
    """
    M, D = x.shape
    H = w1.shape[1]
    out_dtype = x.dtype

    b1 = b1.reshape(1, H)
    b2 = b2.reshape(1, D)

    # Lane-dense / MXU-friendly padded sizes; clamp tiles for tiny inputs.
    D_pad = _round_up(D, 128)
    tm_eff = min(tm, _round_up(M, 8))
    th_eff = min(th, _round_up(H, 128))
    M_pad = _round_up(M, tm_eff)
    H_pad = _round_up(H, th_eff)

    # Zero-padding is exact: gelu(0)=0 and zero rows/cols of w2/w1 contribute 0.
    cd = compute_dtype
    xp = jnp.zeros((M_pad, D_pad), cd).at[:M, :D].set(x.astype(cd))
    w1p = jnp.zeros((D_pad, H_pad), cd).at[:D, :H].set(w1.astype(cd))
    w2p = jnp.zeros((H_pad, D_pad), cd).at[:H, :D].set(w2.astype(cd))
    b1p = jnp.zeros((1, H_pad), jnp.float32).at[:, :H].set(b1.astype(jnp.float32))
    b2p = jnp.zeros((1, D_pad), jnp.float32).at[:, :D].set(b2.astype(jnp.float32))

    grid = (M_pad // tm_eff, H_pad // th_eff)
    itemsize = jnp.dtype(cd).itemsize
    cost = pl.CostEstimate(
        flops=4 * M_pad * D_pad * H_pad,                 # two matmuls
        transcendentals=M_pad * H_pad,                   # erf
        bytes_accessed=(M_pad * D_pad * itemsize         # x
                        + 2 * D_pad * H_pad * itemsize   # w1, w2
                        + 4 * (H_pad + D_pad)            # biases (f32)
                        + M_pad * D_pad * 4))            # y

    out = pl.pallas_call(
        mlp_kernel,
        out_shape=jax.ShapeDtypeStruct((M_pad, D_pad), out_dtype),
        grid_spec=pltpu.PrefetchScalarGridSpec(
            num_scalar_prefetch=0,
            grid=grid,
            in_specs=[
                pl.BlockSpec((tm_eff, D_pad), lambda i, h: (i, 0)),   # x tile
                pl.BlockSpec((D_pad, th_eff), lambda i, h: (0, h)),   # w1 tile
                pl.BlockSpec((1, th_eff), lambda i, h: (0, h)),       # b1 tile
                pl.BlockSpec((th_eff, D_pad), lambda i, h: (h, 0)),   # w2 tile
                pl.BlockSpec((1, D_pad), lambda i, h: (0, 0)),        # b2
            ],
            out_specs=pl.BlockSpec((tm_eff, D_pad), lambda i, h: (i, 0)),
            scratch_shapes=[pltpu.VMEM((tm_eff, D_pad), jnp.float32)],
        ),
        compiler_params=pltpu.CompilerParams(
            dimension_semantics=("parallel", "arbitrary"),
            vmem_limit_bytes=32 * 1024 * 1024,
        ),
        cost_estimate=cost,
    )(xp, w1p, b1p, w2p, b2p)

    return out[:M, :D]


def init_mlp_params(key, embed_dim, mlp_ratio=4.0, dtype=jnp.float32):
    """Deterministic init matching nn.Linear's uniform(-1/sqrt(fan_in), ...)."""
    hidden = int(embed_dim * mlp_ratio)
    k1, k2, k3, k4 = jax.random.split(key, 4)
    bound1 = 1.0 / jnp.sqrt(embed_dim)
    bound2 = 1.0 / jnp.sqrt(hidden)
    w1 = jax.random.uniform(k1, (embed_dim, hidden), dtype, -bound1, bound1)
    b1 = jax.random.uniform(k2, (hidden,), dtype, -bound1, bound1)
    w2 = jax.random.uniform(k3, (hidden, embed_dim), dtype, -bound2, bound2)
    b2 = jax.random.uniform(k4, (embed_dim,), dtype, -bound2, bound2)
    return w1, b1, w2, b2


if __name__ == "__main__":
    # Small ViT-like shapes: batch=2, seq=8 tokens, embed_dim=32, hidden=128.
    batch, seq, embed_dim = 2, 8, 32
    mlp_ratio = 4.0

    key = jax.random.PRNGKey(0)
    kx, kp = jax.random.split(key)

    x = jax.random.normal(kx, (batch, seq, embed_dim), jnp.float32)
    w1, b1, w2, b2 = init_mlp_params(kp, embed_dim, mlp_ratio)

    # Flatten (batch, seq, D) -> (M, D) for the kernel hot path.
    x2d = x.reshape(batch * seq, embed_dim)

    # Plain-JAX f32 reference (eval-mode dropout = identity).
    h_ref = jax.nn.gelu(x2d @ w1 + b1[None, :], approximate=False)
    ref2d = h_ref @ w2 + b2[None, :]
    ref = ref2d.reshape(batch, seq, embed_dim)

    # 1) f32 compute path: tight check against the reference.
    out_f32 = mlp_forward(x2d, w1, b1, w2, b2,
                          compute_dtype=jnp.float32).reshape(batch, seq, embed_dim)
    jax.block_until_ready(out_f32)
    assert jnp.allclose(out_f32, ref, atol=1e-5, rtol=1e-5), "f32 path mismatch"

    # 2) bf16 compute path (production config): looser tolerance vs f32 ref.
    out_bf16 = mlp_forward(x2d, w1, b1, w2, b2,
                           compute_dtype=jnp.bfloat16).reshape(batch, seq, embed_dim)
    jax.block_until_ready(out_bf16)
    assert out_bf16.shape == ref.shape
    assert jnp.allclose(out_bf16, ref, atol=3e-2, rtol=3e-2), "bf16 path mismatch"

    print("KERNEL_OK")
</pallas_src>

<mosaic_0001>
module attributes {stable_mosaic.version = 11 : i64} {
  func.func @mlp_kernel(%arg0: i32, %arg1: i32, %arg2: memref<16x128xf32, #tpu.memory_space<vmem>>, %arg3: memref<128x128xf32, #tpu.memory_space<vmem>>, %arg4: memref<1x128xf32, #tpu.memory_space<vmem>>, %arg5: memref<128x128xf32, #tpu.memory_space<vmem>>, %arg6: memref<1x128xf32, #tpu.memory_space<vmem>>, %arg7: memref<16x128xf32, #tpu.memory_space<vmem>>, %arg8: memref<16x128xf32, #tpu.memory_space<vmem>>) attributes {dimension_semantics = [#tpu.dimension_semantics<parallel>, #tpu.dimension_semantics<arbitrary>], iteration_bounds = array<i64: 1, 1>, scalar_prefetch = 0 : i64, scratch_operands = 1 : i64, tpu.core_type = #tpu.core_type<tc>, window_params = [{transform_indices = @transform_0, window_bounds = array<i64: 16, 128>}, {transform_indices = @transform_1, window_bounds = array<i64: 128, 128>}, {transform_indices = @transform_2, window_bounds = array<i64: 1, 128>}, {transform_indices = @transform_3, window_bounds = array<i64: 128, 128>}, {pipeline_mode = #tpu.pipeline_mode<synchronous>, transform_indices = @transform_4, window_bounds = array<i64: 1, 128>}, {transform_indices = @transform_5, window_bounds = array<i64: 16, 128>}]} {
    %c0_i32 = arith.constant 0 : i32
    %0 = arith.cmpi eq, %arg1, %c0_i32 : i32
    %1 = arith.extui %0 : i1 to i32
    %c0_i32_0 = arith.constant 0 : i32
    %2 = arith.cmpi ne, %1, %c0_i32_0 : i32
    scf.if %2 {
      %c0_18 = arith.constant 0 : index
      %c0_19 = arith.constant 0 : index
      %25 = vector.load %arg6[%c0_18, %c0_19] : memref<1x128xf32, #tpu.memory_space<vmem>>, vector<1x128xf32>
      %26 = vector.shape_cast %25 : vector<1x128xf32> to vector<1x128xf32>
      %27 = vector.broadcast %26 : vector<1x128xf32> to vector<16x128xf32>
      %c0_20 = arith.constant 0 : index
      %c0_21 = arith.constant 0 : index
      %28 = vector.load %arg8[%c0_20, %c0_21] : memref<16x128xf32, #tpu.memory_space<vmem>>, vector<16x128xf32>
      tpu.vector_store %arg8[%c0_20, %c0_21], %27 {strides = array<i32>} : memref<16x128xf32, #tpu.memory_space<vmem>>, vector<16x128xf32>,
    } else {
    }
    %c0 = arith.constant 0 : index
    %c0_1 = arith.constant 0 : index
    %3 = vector.load %arg2[%c0, %c0_1] : memref<16x128xf32, #tpu.memory_space<vmem>>, vector<16x128xf32>
    %c0_2 = arith.constant 0 : index
    %c0_3 = arith.constant 0 : index
    %4 = vector.load %arg3[%c0_2, %c0_3] : memref<128x128xf32, #tpu.memory_space<vmem>>, vector<128x128xf32>
    %cst = arith.constant dense<0.000000e+00> : vector<16x128xf32>
    %5 = tpu.matmul %3, %4, %cst {dimension_numbers = #tpu.dot_dimension_numbers<[1], [0], [0], [1], [0, 0, 1, 1], [], []>} : vector<16x128xf32>, vector<128x128xf32>, vector<16x128xf32> -> vector<16x128xf32>
    %c0_4 = arith.constant 0 : index
    %c0_5 = arith.constant 0 : index
    %6 = vector.load %arg4[%c0_4, %c0_5] : memref<1x128xf32, #tpu.memory_space<vmem>>, vector<1x128xf32>
    %7 = vector.broadcast %6 : vector<1x128xf32> to vector<16x128xf32>
    %8 = arith.addf %5, %7 : vector<16x128xf32>
    %cst_6 = arith.constant 5.000000e-01 : f32
    %9 = vector.broadcast %cst_6 : f32 to vector<16x128xf32>
    %10 = arith.mulf %9, %8 : vector<16x128xf32>
    %cst_7 = arith.constant 0.707106769 : f32
    %11 = vector.broadcast %cst_7 : f32 to vector<16x128xf32>
    %12 = arith.mulf %8, %11 : vector<16x128xf32>
    %13 = math.erf %12 : vector<16x128xf32>
    %cst_8 = arith.constant 1.000000e+00 : f32
    %14 = vector.broadcast %cst_8 : f32 to vector<16x128xf32>
    %15 = arith.addf %14, %13 : vector<16x128xf32>
    %16 = arith.mulf %10, %15 : vector<16x128xf32>
    %c0_9 = arith.constant 0 : index
    %c0_10 = arith.constant 0 : index
    %17 = vector.load %arg8[%c0_9, %c0_10] : memref<16x128xf32, #tpu.memory_space<vmem>>, vector<16x128xf32>
    %c0_11 = arith.constant 0 : index
    %c0_12 = arith.constant 0 : index
    %18 = vector.load %arg5[%c0_11, %c0_12] : memref<128x128xf32, #tpu.memory_space<vmem>>, vector<128x128xf32>
    %cst_13 = arith.constant dense<0.000000e+00> : vector<16x128xf32>
    %19 = tpu.matmul %16, %18, %cst_13 {dimension_numbers = #tpu.dot_dimension_numbers<[1], [0], [0], [1], [0, 0, 1, 1], [], []>} : vector<16x128xf32>, vector<128x128xf32>, vector<16x128xf32> -> vector<16x128xf32>
    %20 = arith.addf %17, %19 : vector<16x128xf32>
    %c0_14 = arith.constant 0 : index
    %c0_15 = arith.constant 0 : index
    %21 = vector.load %arg8[%c0_14, %c0_15] : memref<16x128xf32, #tpu.memory_space<vmem>>, vector<16x128xf32>
    tpu.vector_store %arg8[%c0_14, %c0_15], %20 {strides = array<i32>} : memref<16x128xf32, #tpu.memory_space<vmem>>, vector<16x128xf32>,
    %c0_i32_16 = arith.constant 0 : i32
    %22 = arith.cmpi eq, %arg1, %c0_i32_16 : i32
    %23 = arith.extui %22 : i1 to i32
    %c0_i32_17 = arith.constant 0 : i32
    %24 = arith.cmpi ne, %23, %c0_i32_17 : i32
    scf.if %24 {
      %c0_18 = arith.constant 0 : index
      %c0_19 = arith.constant 0 : index
      %25 = vector.load %arg8[%c0_18, %c0_19] : memref<16x128xf32, #tpu.memory_space<vmem>>, vector<16x128xf32>
      %c0_20 = arith.constant 0 : index
      %c0_21 = arith.constant 0 : index
      %26 = vector.load %arg7[%c0_20, %c0_21] : memref<16x128xf32, #tpu.memory_space<vmem>>, vector<16x128xf32>
      tpu.vector_store %arg7[%c0_20, %c0_21], %25 {strides = array<i32>} : memref<16x128xf32, #tpu.memory_space<vmem>>, vector<16x128xf32>,
    } else {
    }
    return
  }
  func.func @transform_0(%arg0: i32, %arg1: i32) -> (i32, i32) {
    %c0_i32 = arith.constant 0 : i32
    %c0_i32_0 = arith.constant 0 : i32
    return %arg0, %c0_i32 : i32, i32
  }
  func.func @transform_1(%arg0: i32, %arg1: i32) -> (i32, i32) {
    %c0_i32 = arith.constant 0 : i32
    %c0_i32_0 = arith.constant 0 : i32
    return %c0_i32, %arg1 : i32, i32
  }
  func.func @transform_2(%arg0: i32, %arg1: i32) -> (i32, i32) {
    %c0_i32 = arith.constant 0 : i32
    %c0_i32_0 = arith.constant 0 : i32
    return %c0_i32, %arg1 : i32, i32
  }
  func.func @transform_3(%arg0: i32, %arg1: i32) -> (i32, i32) {
    %c0_i32 = arith.constant 0 : i32
    %c0_i32_0 = arith.constant 0 : i32
    return %arg1, %c0_i32 : i32, i32
  }
  func.func @transform_4(%arg0: i32, %arg1: i32) -> (i32, i32) {
    %c0_i32 = arith.constant 0 : i32
    %c0_i32_0 = arith.constant 0 : i32
    %c0_i32_1 = arith.constant 0 : i32
    return %c0_i32, %c0_i32_0 : i32, i32
  }
  func.func @transform_5(%arg0: i32, %arg1: i32) -> (i32, i32) {
    %c0_i32 = arith.constant 0 : i32
    %c0_i32_0 = arith.constant 0 : i32
    return %arg0, %c0_i32 : i32, i32
  }
}

</mosaic_0001>

<bundles_post_ra>
// kernel: mlp_forward.1
= control target key start
LH: loop header
LB: loop body
LE: loop exit
PB: predicated region body
PF: predicated region fallthrough
CT: control target
= control target key end

     0   :  { %s620_s0 = inlined_call_operand.vmem [shape: f32[16,128], index: 0, kind: input, shape index: {}]   ;;  %s621_s1 = inlined_call_operand.vmem [shape: f32[128,128], index: 1, kind: input, shape index: {}]   ;;  %s622_s2 = inlined_call_operand.vmem [shape: f32[1,128], index: 2, kind: input, shape index: {}]   ;;  %s623_s3 = inlined_call_operand.vmem [shape: f32[128,128], index: 3, kind: input, shape index: {}]   ;;  %s624_s4 = inlined_call_operand.vmem [shape: f32[1,128], index: 4, kind: input, shape index: {}]   ;;  %s625_s5 = inlined_call_operand.hbm [shape: f32[16,128], index: 5, kind: output, shape index: {}]  }
   0x1   :  { %v36_v0 = vld [vmem:[%s621_s1] sm:$0xff]  ;;  %v37_v1 = vld [vmem:[%s621_s1 + $0x8] sm:$0xff]  ;;  %v38_v2 = vld [vmem:[%s621_s1 + $0x10] sm:$0xff] }
   0x2   :  { %v372_v3 = vpack.c.bf16 %v37_v1, %v36_v0  ;;  %v39_v4 = vld [vmem:[%s621_s1 + $0x18] sm:$0xff]  ;;  %v40_v6 = vld [vmem:[%s621_s1 + $0x20] sm:$0xff]  ;;  %v41_v7 = vld [vmem:[%s621_s1 + $0x28] sm:$0xff] }
   0x3   :  { %v376_v5 = vpack.c.bf16 %v39_v4, %v38_v2  ;;  %v380_v8 = vpack.c.bf16 %v41_v7, %v40_v6  ;;  %v42_v9 = vld [vmem:[%s621_s1 + $0x30] sm:$0xff]  ;;  %v43_v10 = vld [vmem:[%s621_s1 + $0x38] sm:$0xff]  ;;  %v34_v11 = vld [vmem:[%s620_s0] sm:$0xff] }
   0x4   :  { %373 = vmatprep.subr.bf16.mxu0 %v372_v3  ;;  %334 = vmatprep.mubr.f32.mxu0 %v34_v11  ;;  %v146_v12 = vld [vmem:[%s623_s3] sm:$0xff]  ;;  %v147_v13 = vld [vmem:[%s623_s3 + $0x8] sm:$0xff]  ;;  %v148_v14 = vld [vmem:[%s623_s3 + $0x10] sm:$0xff] }
   0x5   :  { %375 = vmatpush3.bf16.msra.mxu0 %v372_v3  ;;  %v404_v15 = vpack.c.bf16 %v147_v13, %v146_v12  ;;  %v149_v16 = vld [vmem:[%s623_s3 + $0x18] sm:$0xff]  ;;  %v150_v18 = vld [vmem:[%s623_s3 + $0x20] sm:$0xff]  ;;  %v151_v19 = vld [vmem:[%s623_s3 + $0x28] sm:$0xff] }
   0x6   :  { %377 = vmatprep.subr.bf16.mxu0 %v376_v5  ;;  %v408_v17 = vpack.c.bf16 %v149_v16, %v148_v14 }
   0x9   :  { %379 = vmatpush3.bf16.msra.mxu0 %v376_v5 }
   0xa   :  { %10 = vsyncpa [#allocation4], 0  ;;  %381 = vmatprep.subr.bf16.mxu0 %v380_v8  ;;  %v384_v20 = vpack.c.bf16 %v43_v10, %v42_v9  ;;  %405 = vmatprep.subr.bf16.mxu1 %v404_v15  ;;  %v44_v21 = vld [vmem:[%s621_s1 + $0x40] sm:$0xff]  ;;  %v45_v22 = vld [vmem:[%s621_s1 + $0x48] sm:$0xff]  ;;  %v412_v23 = vpack.c.bf16 %v151_v19, %v150_v18  ;;  %s467_s11 = smov [#allocation3]  }
   0xb   :  { %407 = vmatpush3.bf16.msra.mxu1 %v404_v15  ;;  %v388_v24 = vpack.c.bf16 %v45_v22, %v44_v21  ;;  %v46_v25 = vld [vmem:[%s621_s1 + $0x50] sm:$0xff]  ;;  %v47_v26 = vld [vmem:[%s621_s1 + $0x58] sm:$0xff]  ;;  %v48_v28 = vld [vmem:[%s621_s1 + $0x60] sm:$0xff]  ;;  %s253_s12 = sshll.u32 %s467_s11, 4  ;;  %s254_s12 = int_to_ptr.vmem [resolvable:$true] %s253_s12 }
   0xc   :  { %409 = vmatprep.subr.bf16.mxu1 %v408_v17  ;;  %v392_v27 = vpack.c.bf16 %v47_v26, %v46_v25  ;;  %v49_v29 = vld [vmem:[%s621_s1 + $0x68] sm:$0xff]  ;;  %v50_v31 = vld [vmem:[%s621_s1 + $0x70] sm:$0xff]  ;;  %v51_v32 = vld [vmem:[%s621_s1 + $0x78] sm:$0xff]  ;;  %s443_s13 = scalar_lea.vmem %s254_s12, 256  ;;  %p448_p1 = scmp.lt.s32.totalorder %s254_s12, %s254_s12 }
   0xd   :  { %383 = vmatpush3.bf16.msra.mxu0 %v380_v8  ;;  %v396_v30 = vpack.c.bf16 %v49_v29, %v48_v28  ;;  %v400_v33 = vpack.c.bf16 %v51_v32, %v50_v31  ;;  %v35_v34 = vld [vmem:[%s620_s0 + $0x8] sm:$0xff]  ;;  %v152_v35 = vld [vmem:[%s623_s3 + $0x30] sm:$0xff]  ;;  %v153_v36 = vld [vmem:[%s623_s3 + $0x38] sm:$0xff]  ;;  %p444_p0 = scmp.ne.s32.totalorder %s254_s12, %s443_s13  ;;  %p449_p2 = scmp.lt.s32.totalorder %s443_s13, %s443_s13 }
   0xe   :  { %385 = vmatprep.subr.bf16.mxu0 %v384_v20  ;;  %v416_v37 = vpack.c.bf16 %v153_v36, %v152_v35  ;;  %v154_v38 = vld [vmem:[%s623_s3 + $0x40] sm:$0xff]  ;;  %v155_v39 = vld [vmem:[%s623_s3 + $0x48] sm:$0xff]  ;;  %v156_v41 = vld [vmem:[%s623_s3 + $0x50] sm:$0xff] }
   0xf   :  { %411 = vmatpush3.bf16.msra.mxu1 %v408_v17  ;;  %v420_v40 = vpack.c.bf16 %v155_v39, %v154_v38  ;;  %v157_v42 = vld [vmem:[%s623_s3 + $0x58] sm:$0xff]  ;;  %v158_v44 = vld [vmem:[%s623_s3 + $0x60] sm:$0xff]  ;;  %v159_v45 = vld [vmem:[%s623_s3 + $0x68] sm:$0xff]  ;;  %p450_p3 = por %p449_p2, %p448_p1 }
  0x10   :  { %413 = vmatprep.subr.bf16.mxu1 %v412_v23  ;;  %v424_v43 = vpack.c.bf16 %v157_v42, %v156_v41  ;;  %v428_v46 = vpack.c.bf16 %v159_v45, %v158_v44  ;;  %v160_v47 = vld [vmem:[%s623_s3 + $0x70] sm:$0xff]  ;;  %v161_v48 = vld [vmem:[%s623_s3 + $0x78] sm:$0xff]  ;;  %v265_v50 = vld [vmem:[%s622_s2] ss:$0 sm:$0xff] }
  0x11   :  { %387 = vmatpush3.bf16.msra.mxu0 %v384_v20  ;;  %v432_v49 = vpack.c.bf16 %v161_v48, %v160_v47  ;;  %v264_v1 = vld [vmem:[%s624_s4] ss:$0 sm:$0xff]  ;;  %p451_p4 = pnand %p450_p3, %p444_p0 }
  0x12   :  { %389 = vmatprep.subr.bf16.mxu0 %v388_v24 }
  0x13   :  { %415 = vmatpush3.bf16.msra.mxu1 %v412_v23 }
  0x14   :  { %417 = vmatprep.subr.bf16.mxu1 %v416_v37 }
  0x15   :  { %391 = vmatpush3.bf16.msra.mxu0 %v388_v24 }
  0x16   :  { %393 = vmatprep.subr.bf16.mxu0 %v392_v27 }
  0x17   :  { %419 = vmatpush3.bf16.msra.mxu1 %v416_v37 }
  0x18   :  { %421 = vmatprep.subr.bf16.mxu1 %v420_v40 }
  0x19   :  { %395 = vmatpush3.bf16.msra.mxu0 %v392_v27 }
  0x1a   :  { %397 = vmatprep.subr.bf16.mxu0 %v396_v30 }
  0x1b   :  { %423 = vmatpush3.bf16.msra.mxu1 %v420_v40 }
  0x1c   :  { %425 = vmatprep.subr.bf16.mxu1 %v424_v43 }
  0x1d   :  { %399 = vmatpush3.bf16.msra.mxu0 %v396_v30 }
  0x1e   :  { %401 = vmatprep.subr.bf16.mxu0 %v400_v33 }
  0x1f   :  { %427 = vmatpush3.bf16.msra.mxu1 %v424_v43 }
  0x20   :  { %429 = vmatprep.subr.bf16.mxu1 %v428_v46 }
  0x21   :  { %403 = vmatpush3.bf16.msra.mxu0 %v400_v33 }
  0x23   :  { %431 = vmatpush3.bf16.msra.mxu1 %v428_v46 }
  0x24   :  { %335 = vmatmul.mubr.f32.vlgmr.msra.gmra.mrb[0].mxu0 %v35_v34  ;;  %433 = vmatprep.subr.bf16.mxu1 %v432_v49 }
  0x27   :  { %435 = vmatpush3.bf16.msra.mxu1 %v432_v49 }
  0xf7   :  { %v336_v51 = vpop.f32.mrb[0].mxu0 }
  0xf8   :  { %v131_v52 = vadd.f32 %v336_v51, %v265_v50  ;;  %v125_v53 = vpop.f32.mrb[1].mxu0 }
  0xf9   :  { %v126_v54 = vadd.f32 %v265_v50, %v125_v53 }
  0xfa   :  { %v137_v55 = vmul.f32 0.70710677, %v131_v52  ;;  %v135_v62 = vmul.f32 0.5, %v131_v52 }
  0xfb   :  { %v136_v56 = vmul.f32 0.70710677, %v126_v54  ;;  %v134_v60 = vmul.f32 0.5, %v126_v54 }
  0xfc   :  { %439 = verf.f32 %v137_v55 }
  0xfd   :  { %441 = verf.f32 %v136_v56 }
 0x106   :  { %v440_v57 = vpop.eup %439 }
 0x107   :  { %v442_v58 = vpop.eup %441  ;;  %v141_v59 = vadd.f32 1.0, %v440_v57 }
 0x108   :  { %v140_v61 = vadd.f32 1.0, %v442_v58 }
 0x109   :  { %v143_v0 = vmul.f32 %v141_v59, %v135_v62 }
 0x10a   :  { %v142_v63 = vmul.f32 %v140_v61, %v134_v60 }
 0x10c   :  { %369 = vmatprep.mubr.f32.mxu1 %v142_v63 }
 0x10d   :  { %370 = vmatmul.mubr.f32.vlgmr.msra.gmra.mrb[0].mxu1 %v143_v0 }
 0x1e0   :  { %v371_v2 = vpop.f32.mrb[0].mxu1 }
 0x1e1   :  { %v238_v3 = vadd.f32 %v371_v2, %v264_v1  ;;  %v228_v4 = vpop.f32.mrb[1].mxu1 }
 0x1e2   :  { %v237_v5 = vadd.f32 %v264_v1, %v228_v4 }
 0x1e3   :  { %247 = vst [vmem:[#allocation3 + $0x8] sm:$0xff] %v238_v3 }
 0x1e4   :  { %246 = vst [vmem:[#allocation3] sm:$0xff] %v237_v5 }
 0x1e5   :  { %454 = shalt.err (!%p451_p4)
}
 0x1e6   :  { %s455_s4 = scalar_lea.hbm %s625_s5, 256 }
 0x1e7   :  { %p456_p5 = scmp.ne.s32.totalorder %s625_s5, %s455_s4  ;;  %p459_p6 = scmp.lt.u32.totalorder %s455_s4, %s625_s5 }
 0x1e9   :  { %p461_p7 = pnand %p459_p6, %p456_p5 }
 0x1eb   :  { %464 = shalt.err (!%p461_p7)
}
 0x1ec   :  { %s468_s1 = smov 128   ;;  %s469_s20 = smov 8  }
 0x1ed   :  { %259 = dma.vmem_to_hbm [thread:$0]  %s254_s12, 256, %s625_s5, [#allocation4], %s468_s1, %s468_s1, %s469_s20  }
 0x1ee   :  { %465 = dma.done.wait [#allocation4], 256  }
 0x1ef   :  { %466 = vsyncadd [#allocation4], 4294967040 }
 0x1f0   :  { %263 = vsyncpa [#allocation4], 1 }

</bundles_post_ra>
